<compile_context>
chip_gen: v5e
topology: v5e:2x2
jax: 0.10.0
libtpu: 0.0.40
codegen_flags: <defaults>
</compile_context>

<pallas_src>
import jax
import jax.numpy as jnp
from jax import lax
from jax.experimental import pallas as pl
from jax.experimental.pallas import tpu as pltpu


_LANE = 128                       # lane (last-dim) tile
_SUBLANE = 8                      # sublane tile for f32
_MAX_TB = 4096                    # hard cap on the batch tile (rows)
_VMEM_BUDGET = 40 * 1024 * 1024   # conservative planning budget (fits every gen)


def _round_up(n, m):
    return ((n + m - 1) // m) * m


def _cdiv(a, b):
    return (a + b - 1) // b


def _pad2d(a, rows, cols):
    r, c = a.shape
    if r == rows and c == cols:
        return a
    return jnp.pad(a, ((0, rows - r), (0, cols - c)))


def _const_spec(shape):
    """Whole-array, grid-invariant block; single-buffered (it never changes)."""
    try:
        return pl.BlockSpec(shape, lambda i: (0, 0), pipeline_mode=pl.Buffered(1))
    except Exception:  # older jax without pipeline_mode -- fall back silently
        return pl.BlockSpec(shape, lambda i: (0, 0))


# ----------------------------------------------------------------------------
# Fused MLP kernel (built per layer-count / relu pattern / proj / pre-bias)
# ----------------------------------------------------------------------------
def _make_fused_kernel(num_layers, relu_flags, has_proj, apply_pre, precision):
    def kernel(*refs):
        i = 0
        pre_ref = None
        if apply_pre:
            pre_ref = refs[0]
            i = 1
        x_ref = refs[i]
        o_ref = refs[-1]
        params = refs[i + 1:-1]

        x = x_ref[...]                                    # (TB, Din_pad) f32
        pos = 0
        if has_proj:                                      # inputs @ weights (MXU)
            w = params[0][...]
            x = jnp.dot(x.astype(w.dtype), w,
                        preferred_element_type=jnp.float32, precision=precision)
            pos = 1
        if apply_pre:                                     # scalar pre-bias, once
            x = x + pre_ref[0]

        for li in range(num_layers):                      # Linear (+ ReLU)
            w = params[pos + 2 * li][...]
            b = params[pos + 2 * li + 1][...]
            x = jnp.dot(x.astype(w.dtype), w,
                        preferred_element_type=jnp.float32,
                        precision=precision) + b.astype(jnp.float32)
            if relu_flags[li]:
                x = jnp.maximum(x, 0.0)

        o_ref[...] = x.astype(o_ref.dtype)

    return kernel


# ----------------------------------------------------------------------------
# FeedForwardNN equivalent
# ----------------------------------------------------------------------------
class FeedForwardNN:
    """JAX/Pallas port of the PyTorch FeedForwardNN (fused single-kernel forward)."""

    def __init__(self, input_size, output_size, hidden_shape, key,
                 param_dtype=jnp.float32):
        self.input_size = int(input_size)
        self.output_size = int(output_size)
        self.param_dtype = jnp.dtype(param_dtype)
        sizes = [self.input_size] + [int(h) for h in hidden_shape] + [self.output_size]
        self.relu_flags = tuple([True] * len(hidden_shape) + [False])

        self.params = []         # un-padded f32 (reference path)
        self.padded_params = []  # zero-padded to lane multiples (kernel path)
        for i in range(len(sizes) - 1):
            fan_in, fan_out = sizes[i], sizes[i + 1]
            key, kw, kb = jax.random.split(key, 3)
            bound = fan_in ** -0.5
            W = jax.random.uniform(kw, (fan_in, fan_out), jnp.float32, -bound, bound)
            b = jax.random.uniform(kb, (1, fan_out), jnp.float32, -bound, bound)
            self.params.append((W, b))
            Wp = _pad2d(W, _round_up(fan_in, _LANE),
                        _round_up(fan_out, _LANE)).astype(self.param_dtype)
            bp = _pad2d(b, 1, _round_up(fan_out, _LANE)).astype(self.param_dtype)
            self.padded_params.append((Wp, bp))

        self.in_pad = _round_up(self.input_size, _LANE)
        self.final_out_pad = self.padded_params[-1][0].shape[1]
        self.max_width_pad = max(
            [self.in_pad] + [Wp.shape[1] for Wp, _ in self.padded_params])
        # f32 params: HIGHEST so the kernel matches a true-f32 reference to 1e-4.
        # bf16 params: DEFAULT (bf16 MXU products are already exact, f32 accum).
        self._precision = (lax.Precision.HIGHEST
                           if self.param_dtype == jnp.float32
                           else lax.Precision.DEFAULT)

    # ------------------------------------------------------------------ kernel
    def forward(self, inputs, weights=None, bias=0.0, max_batch_tile=None):
        x = jnp.asarray(inputs, dtype=jnp.float32)
        if x.ndim != 2:
            raise ValueError(f"expected 2-D inputs, got shape {x.shape}")
        batch, feat = x.shape
        has_proj = weights is not None
        # Compile-time switch: skip the scalar add entirely when bias is a
        # literal zero (no SMEM operand, no VPU broadcast add).
        apply_pre = not (isinstance(bias, (int, float)) and bias == 0)

        if has_proj:
            w = jnp.asarray(weights, dtype=jnp.float32)
            if w.shape != (feat, self.input_size):
                raise ValueError(
                    f"projection weights must have shape "
                    f"{(feat, self.input_size)}, got {w.shape}")
        elif feat != self.input_size:
            raise ValueError(
                f"inputs have {feat} features but the network expects "
                f"{self.input_size}")

        feat_pad = _round_up(feat, _LANE)
        # Feature-dim zero pad is REQUIRED (padded K columns must meet zero
        # weight rows); the batch dim is NOT padded -- the last block is ragged
        # and Pallas masks its store.
        x_pad = _pad2d(x, batch, feat_pad)

        # ---- resident (grid-invariant) parameter bytes & per-row activation bytes
        param_bytes = 0
        wp = None
        if has_proj:
            wp = _pad2d(w, feat_pad, self.in_pad).astype(self.param_dtype)
            param_bytes += wp.size * wp.dtype.itemsize
        for Wp, bp in self.padded_params:
            param_bytes += Wp.size * Wp.dtype.itemsize + bp.size * bp.dtype.itemsize
        if param_bytes > _VMEM_BUDGET // 2:
            # TODO(synk): K/N-tiled fallback for layers too wide to keep resident
            # (v7x has only 64 MiB VMEM per TensorCore).
            raise NotImplementedError(
                "layer weights too large to keep VMEM-resident")

        bytes_per_row = (feat_pad * 4 * 2               # x block, double-buffered
                         + self.final_out_pad * 4 * 2   # out block, double-buffered
                         + self.max_width_pad * 4 * 3)  # live f32 intermediates
        tb_cap = (_VMEM_BUDGET - param_bytes) // bytes_per_row
        tb_cap = max(_SUBLANE, min(_MAX_TB, (tb_cap // _SUBLANE) * _SUBLANE))
        if max_batch_tile is not None:
            tb_cap = max(_SUBLANE,
                         _round_up(min(tb_cap, int(max_batch_tile)), _SUBLANE))
        tb = min(tb_cap, _round_up(batch, _SUBLANE))
        n_blocks = _cdiv(batch, tb)
        if n_blocks > 1:
            # Near-equal blocks, even-ish count: lets the "parallel" axis shard
            # across both TensorCores on v7x.
            n_blocks = _round_up(n_blocks, 2)
            tb = _round_up(_cdiv(batch, n_blocks), _SUBLANE)
            n_blocks = _cdiv(batch, tb)

        # ---- operands / specs
        operands = []
        in_specs = []
        if apply_pre:
            operands.append(jnp.full((1,), bias, dtype=jnp.float32))
            in_specs.append(pl.BlockSpec(memory_space=pltpu.MemorySpace.SMEM))
        operands.append(x_pad)
        in_specs.append(pl.BlockSpec((tb, feat_pad), lambda i: (i, 0)))

        flops = 0
        bytes_accessed = x_pad.size * 4 + param_bytes + batch * self.final_out_pad * 4
        if has_proj:
            operands.append(wp)
            in_specs.append(_const_spec(wp.shape))
            flops += 2 * batch * feat_pad * self.in_pad
        for Wp, bp in self.padded_params:
            operands += [Wp, bp]
            in_specs += [_const_spec(Wp.shape), _const_spec(bp.shape)]
            flops += 2 * batch * Wp.shape[0] * Wp.shape[1]

        vmem_need = param_bytes + tb * bytes_per_row
        vmem_limit = int(min(max(int(vmem_need * 1.3) + (4 << 20), 32 << 20),
                             64 << 20))

        kernel = _make_fused_kernel(len(self.padded_params), self.relu_flags,
                                    has_proj, apply_pre, self._precision)

        out = pl.pallas_call(
            kernel,
            out_shape=jax.ShapeDtypeStruct((batch, self.final_out_pad),
                                           jnp.float32),
            grid=(n_blocks,),
            in_specs=in_specs,
            out_specs=pl.BlockSpec((tb, self.final_out_pad), lambda i: (i, 0)),
            compiler_params=pltpu.CompilerParams(
                dimension_semantics=("parallel",),
                vmem_limit_bytes=vmem_limit),
            cost_estimate=pl.CostEstimate(flops=int(flops), transcendentals=0,
                                          bytes_accessed=int(bytes_accessed)),
        )(*operands)

        return out[:, :self.output_size]

    # --------------------------------------------------------------- reference
    def forward_ref(self, inputs, weights=None, bias=0.0):
        x = jnp.asarray(inputs, dtype=jnp.float32)
        hp = lax.Precision.HIGHEST
        if weights is not None:
            x = jnp.dot(x, jnp.asarray(weights, dtype=jnp.float32), precision=hp)
        x = x + bias
        for (W, b), relu in zip(self.params, self.relu_flags):
            x = jnp.dot(x, W, precision=hp) + b
            if relu:
                x = jnp.maximum(x, 0.0)
        return x


# ----------------------------------------------------------------------------
if __name__ == "__main__":
    key = jax.random.PRNGKey(0)
    k_params, k_x, k_w, k_x2 = jax.random.split(key, 4)

    batch = 4
    input_size = 32
    hidden_shape = (64, 32)
    output_size = 16

    model = FeedForwardNN(input_size, output_size, hidden_shape, k_params)

    x = jax.random.normal(k_x, (batch, input_size), dtype=jnp.float32)

    # Case 1: default forward (weights=None, bias=0) -> pre-bias operand elided.
    out1 = model.forward(x)
    jax.block_until_ready(out1)
    ref1 = model.forward_ref(x)
    assert out1.shape == (batch, output_size)
    assert jnp.allclose(out1, ref1, atol=2e-4, rtol=2e-4), \
        float(jnp.max(jnp.abs(out1 - ref1)))

    # Case 2: input-projection `weights` + scalar pre-bias.
    proj = jax.random.normal(k_w, (input_size, input_size), dtype=jnp.float32) * 0.1
    out2 = model.forward(x, weights=proj, bias=0.5)
    jax.block_until_ready(out2)
    ref2 = model.forward_ref(x, weights=proj, bias=0.5)
    assert out2.shape == (batch, output_size)
    assert jnp.allclose(out2, ref2, atol=2e-4, rtol=2e-4), \
        float(jnp.max(jnp.abs(out2 - ref2)))

    # Case 3: ragged multi-block grid (batch not a multiple of the tile; tile
    # forced small so the grid has several blocks and a masked tail block).
    batch3 = 37
    x3 = jax.random.normal(k_x2, (batch3, input_size), dtype=jnp.float32)
    out3 = model.forward(x3, bias=0.25, max_batch_tile=16)
    jax.block_until_ready(out3)
    ref3 = model.forward_ref(x3, bias=0.25)
    assert out3.shape == (batch3, output_size)
    assert jnp.allclose(out3, ref3, atol=2e-4, rtol=2e-4), \
        float(jnp.max(jnp.abs(out3 - ref3)))

    # Case 4: bf16 parameters (f32 accumulation) -- bf16-native MXU fast path.
    # Loose tolerance: bf16 params are not expected to match the f32 reference
    # to 1e-4 (gated per the review's correctness note).
    model_bf16 = FeedForwardNN(input_size, output_size, hidden_shape, k_params,
                               param_dtype=jnp.bfloat16)
    out4 = model_bf16.forward(x, weights=proj, bias=0.5)
    jax.block_until_ready(out4)
    ref4 = model_bf16.forward_ref(x, weights=proj, bias=0.5)
    assert out4.shape == (batch, output_size)
    assert bool(jnp.all(jnp.isfinite(out4)))
    assert jnp.allclose(out4, ref4, atol=1e-1, rtol=1e-1)

    print("KERNEL_OK")
</pallas_src>

<mosaic_0001>
module attributes {stable_mosaic.version = 11 : i64} {
  func.func @kernel(%arg0: i32, %arg1: memref<8x128xf32, #tpu.memory_space<vmem>>, %arg2: memref<128x128xf32, #tpu.memory_space<vmem>>, %arg3: memref<1x128xf32, #tpu.memory_space<vmem>>, %arg4: memref<128x128xf32, #tpu.memory_space<vmem>>, %arg5: memref<1x128xf32, #tpu.memory_space<vmem>>, %arg6: memref<128x128xf32, #tpu.memory_space<vmem>>, %arg7: memref<1x128xf32, #tpu.memory_space<vmem>>, %arg8: memref<8x128xf32, #tpu.memory_space<vmem>>) attributes {dimension_semantics = [#tpu.dimension_semantics<parallel>], iteration_bounds = array<i64: 1>, scalar_prefetch = 0 : i64, scratch_operands = 0 : i64, tpu.core_type = #tpu.core_type<tc>, window_params = [{transform_indices = @transform_0, window_bounds = array<i64: 8, 128>}, {pipeline_mode = #tpu.pipeline_mode<synchronous>, transform_indices = @transform_1, window_bounds = array<i64: 128, 128>}, {pipeline_mode = #tpu.pipeline_mode<synchronous>, transform_indices = @transform_2, window_bounds = array<i64: 1, 128>}, {pipeline_mode = #tpu.pipeline_mode<synchronous>, transform_indices = @transform_3, window_bounds = array<i64: 128, 128>}, {pipeline_mode = #tpu.pipeline_mode<synchronous>, transform_indices = @transform_4, window_bounds = array<i64: 1, 128>}, {pipeline_mode = #tpu.pipeline_mode<synchronous>, transform_indices = @transform_5, window_bounds = array<i64: 128, 128>}, {pipeline_mode = #tpu.pipeline_mode<synchronous>, transform_indices = @transform_6, window_bounds = array<i64: 1, 128>}, {transform_indices = @transform_7, window_bounds = array<i64: 8, 128>}]} {
    %c0 = arith.constant 0 : index
    %c0_0 = arith.constant 0 : index
    %0 = vector.load %arg1[%c0, %c0_0] : memref<8x128xf32, #tpu.memory_space<vmem>>, vector<8x128xf32>
    %c0_1 = arith.constant 0 : index
    %c0_2 = arith.constant 0 : index
    %1 = vector.load %arg2[%c0_1, %c0_2] : memref<128x128xf32, #tpu.memory_space<vmem>>, vector<128x128xf32>
    %c0_3 = arith.constant 0 : index
    %c0_4 = arith.constant 0 : index
    %2 = vector.load %arg3[%c0_3, %c0_4] : memref<1x128xf32, #tpu.memory_space<vmem>>, vector<1x128xf32>
    %cst = arith.constant dense<0.000000e+00> : vector<8x128xf32>
    %3 = tpu.matmul %0, %1, %cst {dimension_numbers = #tpu.dot_dimension_numbers<[1], [0], [0], [1], [0, 0, 1, 1], [], []>, precision = #tpu.contract_precision<fp32>} : vector<8x128xf32>, vector<128x128xf32>, vector<8x128xf32> -> vector<8x128xf32>
    %4 = vector.broadcast %2 : vector<1x128xf32> to vector<8x128xf32>
    %5 = arith.addf %3, %4 : vector<8x128xf32>
    %cst_5 = arith.constant 0.000000e+00 : f32
    %6 = vector.broadcast %cst_5 : f32 to vector<8x128xf32>
    %7 = arith.maximumf %5, %6 : vector<8x128xf32>
    %c0_6 = arith.constant 0 : index
    %c0_7 = arith.constant 0 : index
    %8 = vector.load %arg4[%c0_6, %c0_7] : memref<128x128xf32, #tpu.memory_space<vmem>>, vector<128x128xf32>
    %c0_8 = arith.constant 0 : index
    %c0_9 = arith.constant 0 : index
    %9 = vector.load %arg5[%c0_8, %c0_9] : memref<1x128xf32, #tpu.memory_space<vmem>>, vector<1x128xf32>
    %cst_10 = arith.constant dense<0.000000e+00> : vector<8x128xf32>
    %10 = tpu.matmul %7, %8, %cst_10 {dimension_numbers = #tpu.dot_dimension_numbers<[1], [0], [0], [1], [0, 0, 1, 1], [], []>, precision = #tpu.contract_precision<fp32>} : vector<8x128xf32>, vector<128x128xf32>, vector<8x128xf32> -> vector<8x128xf32>
    %11 = vector.broadcast %9 : vector<1x128xf32> to vector<8x128xf32>
    %12 = arith.addf %10, %11 : vector<8x128xf32>
    %cst_11 = arith.constant 0.000000e+00 : f32
    %13 = vector.broadcast %cst_11 : f32 to vector<8x128xf32>
    %14 = arith.maximumf %12, %13 : vector<8x128xf32>
    %c0_12 = arith.constant 0 : index
    %c0_13 = arith.constant 0 : index
    %15 = vector.load %arg6[%c0_12, %c0_13] : memref<128x128xf32, #tpu.memory_space<vmem>>, vector<128x128xf32>
    %c0_14 = arith.constant 0 : index
    %c0_15 = arith.constant 0 : index
    %16 = vector.load %arg7[%c0_14, %c0_15] : memref<1x128xf32, #tpu.memory_space<vmem>>, vector<1x128xf32>
    %cst_16 = arith.constant dense<0.000000e+00> : vector<8x128xf32>
    %17 = tpu.matmul %14, %15, %cst_16 {dimension_numbers = #tpu.dot_dimension_numbers<[1], [0], [0], [1], [0, 0, 1, 1], [], []>, precision = #tpu.contract_precision<fp32>} : vector<8x128xf32>, vector<128x128xf32>, vector<8x128xf32> -> vector<8x128xf32>
    %18 = vector.broadcast %16 : vector<1x128xf32> to vector<8x128xf32>
    %19 = arith.addf %17, %18 : vector<8x128xf32>
    %c0_17 = arith.constant 0 : index
    %c0_18 = arith.constant 0 : index
    %20 = vector.load %arg8[%c0_17, %c0_18] : memref<8x128xf32, #tpu.memory_space<vmem>>, vector<8x128xf32>
    tpu.vector_store %arg8[%c0_17, %c0_18], %19 {strides = array<i32>} : memref<8x128xf32, #tpu.memory_space<vmem>>, vector<8x128xf32>,
    return
  }
  func.func @transform_0(%arg0: i32) -> (i32, i32) {
    %c0_i32 = arith.constant 0 : i32
    %c0_i32_0 = arith.constant 0 : i32
    return %arg0, %c0_i32 : i32, i32
  }
  func.func @transform_1(%arg0: i32) -> (i32, i32) {
    %c0_i32 = arith.constant 0 : i32
    %c0_i32_0 = arith.constant 0 : i32
    %c0_i32_1 = arith.constant 0 : i32
    return %c0_i32, %c0_i32_0 : i32, i32
  }
  func.func @transform_2(%arg0: i32) -> (i32, i32) {
    %c0_i32 = arith.constant 0 : i32
    %c0_i32_0 = arith.constant 0 : i32
    %c0_i32_1 = arith.constant 0 : i32
    return %c0_i32, %c0_i32_0 : i32, i32
  }
  func.func @transform_3(%arg0: i32) -> (i32, i32) {
    %c0_i32 = arith.constant 0 : i32
    %c0_i32_0 = arith.constant 0 : i32
    %c0_i32_1 = arith.constant 0 : i32
    return %c0_i32, %c0_i32_0 : i32, i32
  }
  func.func @transform_4(%arg0: i32) -> (i32, i32) {
    %c0_i32 = arith.constant 0 : i32
    %c0_i32_0 = arith.constant 0 : i32
    %c0_i32_1 = arith.constant 0 : i32
    return %c0_i32, %c0_i32_0 : i32, i32
  }
  func.func @transform_5(%arg0: i32) -> (i32, i32) {
    %c0_i32 = arith.constant 0 : i32
    %c0_i32_0 = arith.constant 0 : i32
    %c0_i32_1 = arith.constant 0 : i32
    return %c0_i32, %c0_i32_0 : i32, i32
  }
  func.func @transform_6(%arg0: i32) -> (i32, i32) {
    %c0_i32 = arith.constant 0 : i32
    %c0_i32_0 = arith.constant 0 : i32
    %c0_i32_1 = arith.constant 0 : i32
    return %c0_i32, %c0_i32_0 : i32, i32
  }
  func.func @transform_7(%arg0: i32) -> (i32, i32) {
    %c0_i32 = arith.constant 0 : i32
    %c0_i32_0 = arith.constant 0 : i32
    return %arg0, %c0_i32 : i32, i32
  }
}

</mosaic_0001>

<bundles_post_ra>
// kernel: tpu_custom_call.1
= control target key start
LH: loop header
LB: loop body
LE: loop exit
PB: predicated region body
PF: predicated region fallthrough
CT: control target
= control target key end

     0   :  { %12 = vsyncpa [#allocation3], 0  ;;  %s2098_s0 = inlined_call_operand.hbm [shape: f32[4,128], index: 0, kind: input, shape index: {}]   ;;  %s2099_s1 = inlined_call_operand.hbm [shape: f32[128,128], index: 1, kind: input, shape index: {}]   ;;  %s2100_s2 = inlined_call_operand.vmem [shape: f32[1,128], index: 2, kind: input, shape index: {}]   ;;  %s2101_s3 = inlined_call_operand.hbm [shape: f32[128,128], index: 3, kind: input, shape index: {}]   ;;  %s2102_s4 = inlined_call_operand.vmem [shape: f32[1,128], index: 4, kind: input, shape index: {}]   ;;  %s2103_s5 = inlined_call_operand.hbm [shape: f32[128,128], index: 5, kind: input, shape index: {}]   ;;  %s2104_s6 = inlined_call_operand.vmem [shape: f32[1,128], index: 6, kind: input, shape index: {}]   ;;  %s2105_s7 = inlined_call_operand.hbm [shape: f32[4,128], index: 7, kind: output, shape index: {}]  }
   0x1   :  { %13 = vsyncpa [#allocation6], 0 }
   0x2   :  { %14 = vsyncpa [#allocation9], 0 }
   0x3   :  { %15 = vsyncpa [#allocation4], 0  ;;  %s33_s26 = sshll.u32 %s2099_s1, 4  ;;  %s34_s26 = int_to_ptr.hbm [resolvable:$true] %s33_s26 }
   0x4   :  { %19 = vsyncadd [#allocation3], 64  ;;  %s1338_s27 = smov [#allocation5]   ;;  %s20_s8 = sshll.u32 %s2098_s0, 4  ;;  %s21_s8 = int_to_ptr.hbm [resolvable:$true] %s20_s8 }
   0x5   :  { %s35_s28 = sshll.u32 %s1338_s27, 4  ;;  %s1339_s9 = smov 128   ;;  %s36_s28 = int_to_ptr.vmem [resolvable:$true] %s35_s28 }
   0x6   :  { %s1340_s10 = smov 8   ;;  %s1341_s11 = smov [#allocation2]  }
   0x7   :  { %41 = dma.hbm_to_vmem [thread:$0]  %s34_s26, 2048, %s36_s28, [#allocation6], %s1339_s9, %s1339_s9, %s1340_s10  }
   0x8   :  { %s22_s12 = sshll.u32 %s1341_s11, 4  ;;  %s1342_s13 = smov 64   ;;  %s23_s12 = int_to_ptr.vmem [resolvable:$true] %s22_s12 }
   0x9   :  { %s1343_s14 = smov 4   ;;  %s48_s16 = sshll.u32 %s2101_s3, 4  ;;  %s49_s16 = int_to_ptr.hbm [resolvable:$true] %s48_s16 }
   0xa   :  { %28 = dma.hbm_to_vmem [thread:$0]  %s21_s8, 64, %s23_s12, [#allocation3], %s1342_s13, %s1342_s13, %s1343_s14  }
   0xb   :  { %s1344_s17 = smov [#allocation7]   ;;  %s63_s20 = sshll.u32 %s2103_s5, 4  ;;  %s64_s20 = int_to_ptr.hbm [resolvable:$true] %s63_s20 }
   0xc   :  { %s50_s0 = sshll.u32 %s1344_s17, 4  ;;  %s1345_s21 = smov [#allocation8]   ;;  %s51_s0 = int_to_ptr.vmem [resolvable:$true] %s50_s0 }
   0xd   :  { %56 = dma.hbm_to_vmem [thread:$0]  %s49_s16, 2048, %s51_s0, [#allocation6], %s1339_s9, %s1339_s9, %s1340_s10  }
   0xe   :  { %s65_s22 = sshll.u32 %s1345_s21, 4  ;;  %s66_s22 = int_to_ptr.vmem [resolvable:$true] %s65_s22 }
   0xf   :  { %71 = dma.hbm_to_vmem [thread:$0]  %s64_s20, 2048, %s66_s22, [#allocation9], %s1339_s9, %s1339_s9, %s1340_s10  }
  0x10   :  { %1330 = dma.done.wait [#allocation3], 128  }
  0x11   :  { %1331 = vsyncadd [#allocation3], 4294967168 }
  0x12   :  { %1332 = dma.done.wait [#allocation6], 4096  }
  0x13   :  { %1333 = vsyncadd [#allocation6], 4294963200 }
  0x14   :  { %1334 = dma.done.wait [#allocation9], 2048  }
  0x15   :  { %1335 = vsyncadd [#allocation9], 4294965248  ;;  %v106_v0 = vld [vmem:[#allocation5 + $0x78] sm:$0xff]  ;;  %v105_v1 = vld [vmem:[#allocation5 + $0x70] sm:$0xff] }
  0x16   :  { %v104_v2 = vld [vmem:[#allocation5 + $0x68] sm:$0xff]  ;;  %v1402_v3 = vand.u32 4294901760, %v106_v0  ;;  %v1404_v4 = vand.u32 4294901760, %v105_v1  ;;  %v103_v6 = vld [vmem:[#allocation5 + $0x60] sm:$0xff]  ;;  %v102_v7 = vld [vmem:[#allocation5 + $0x58] sm:$0xff] }
  0x17   :  { %v1406_v5 = vand.u32 4294901760, %v104_v2  ;;  %v101_v8 = vld [vmem:[#allocation5 + $0x50] sm:$0xff]  ;;  %v1408_v9 = vand.u32 4294901760, %v103_v6  ;;  %v1410_v10 = vand.u32 4294901760, %v102_v7  ;;  %v100_v12 = vld [vmem:[#allocation5 + $0x48] sm:$0xff]  ;;  %v99_v13 = vld [vmem:[#allocation5 + $0x40] sm:$0xff] }
  0x18   :  { %v1412_v11 = vand.u32 4294901760, %v101_v8  ;;  %112 = vmatpush.msra.mxu0 %v1402_v3  ;;  %v1416_v14 = vsub.f32 %v106_v0, %v1402_v3  ;;  %v1419_v15 = vsub.f32 %v105_v1, %v1404_v4  ;;  %v1424_v17 = vand.u32 4294901760, %v100_v12  ;;  %308 = vmatpush.msra.mxu3 %v1402_v3  ;;  %v98_v21 = vld [vmem:[#allocation5 + $0x38] sm:$0xff]  ;;  %v97_v34 = vld [vmem:[#allocation5 + $0x30] sm:$0xff]  ;;  %v96_v35 = vld [vmem:[#allocation5 + $0x28] sm:$0xff] }
  0x19   :  { %v1422_v16 = vsub.f32 %v104_v2, %v1406_v5  ;;  %v1428_v18 = vsub.f32 %v103_v6, %v1408_v9  ;;  %v1431_v19 = vsub.f32 %v102_v7, %v1410_v10  ;;  %v1433_v20 = vand.u32 4294901760, %v99_v13  ;;  %v95_v42 = vld [vmem:[#allocation5 + $0x20] sm:$0xff]  ;;  %v94_v47 = vld [vmem:[#allocation5 + $0x18] sm:$0xff]  ;;  %v93_v53 = vld [vmem:[#allocation5 + $0x10] sm:$0xff] }
  0x1a   :  { %114 = vmatpush.msra.mxu0 %v1404_v4  ;;  %v154_v22 = vand.u32 4294901760, %v1416_v14  ;;  %v160_v23 = vand.u32 4294901760, %v1419_v15  ;;  %v1440_v25 = vsub.f32 %v101_v8, %v1412_v11  ;;  %255 = vmatpush.msra.mxu2 %v1416_v14  ;;  %v1446_v28 = vsub.f32 %v100_v12, %v1424_v17  ;;  %v92_v61 = vld [vmem:[#allocation5 + $0x8] sm:$0xff]  ;;  %v91_v2 = vld [vmem:[#allocation5] sm:$0xff] }
  0x1b   :  { %v166_v24 = vand.u32 4294901760, %v1422_v16  ;;  %v172_v26 = vand.u32 4294901760, %v1428_v18  ;;  %v178_v27 = vand.u32 4294901760, %v1431_v19  ;;  %310 = vmatpush.msra.mxu3 %v1404_v4  ;;  %v1459_v32 = vand.u32 4294901760, %v98_v21 }
  0x1c   :  { %v155_v29 = vsub.f32 %v1416_v14, %v154_v22  ;;  %116 = vmatpush.msra.mxu0 %v1406_v5  ;;  %v161_v30 = vsub.f32 %v1419_v15, %v160_v23  ;;  %258 = vmatpush.msra.mxu2 %v1419_v15  ;;  %v1463_v33 = vsub.f32 %v99_v13, %v1433_v20  ;;  %v184_v39 = vand.u32 4294901760, %v1440_v25  ;;  %v468_v14 = vld [vmem:[#allocation7 + $0x78] sm:$0xff] }
  0x1d   :  { %v167_v31 = vsub.f32 %v1422_v16, %v166_v24  ;;  %312 = vmatpush.msra.mxu3 %v1406_v5  ;;  %v173_v38 = vsub.f32 %v1428_v18, %v172_v26  ;;  %v179_v40 = vsub.f32 %v1431_v19, %v178_v27  ;;  %v190_v41 = vand.u32 4294901760, %v1446_v28 }
  0x1e   :  { %v156_v36 = vand.u32 4294901760, %v155_v29  ;;  %v162_v37 = vand.u32 4294901760, %v161_v30  ;;  %118 = vmatpush.msra.mxu0 %v1408_v9  ;;  %261 = vmatpush.msra.mxu2 %v1422_v16  ;;  %v1478_v44 = vand.u32 4294901760, %v97_v34  ;;  %v1481_v45 = vsub.f32 %v98_v21, %v1459_v32  ;;  %v90_v29 = vld [vmem:[#allocation2] sm:$0xff] }
  0x1f   :  { %314 = vmatpush.msra.mxu3 %v1408_v9  ;;  %v168_v43 = vand.u32 4294901760, %v167_v31  ;;  %v1483_v46 = vand.u32 4294901760, %v96_v35  ;;  %v196_v48 = vand.u32 4294901760, %v1463_v33  ;;  %v174_v49 = vand.u32 4294901760, %v173_v38 }
  0x20   :  { %157 = vmatpush.msra.mxu1 %v156_v36  ;;  %120 = vmatpush.msra.mxu0 %v1410_v10  ;;  %v185_v50 = vsub.f32 %v1440_v25, %v184_v39  ;;  %v1493_v51 = vsub.f32 %v97_v34, %v1478_v44  ;;  %v1495_v52 = vand.u32 4294901760, %v95_v42  ;;  %v1497_v54 = vand.u32 4294901760, %v94_v47 }
  0x21   :  { %264 = vmatpush.msra.mxu2 %v1428_v18  ;;  %316 = vmatpush.msra.mxu3 %v1410_v10  ;;  %v180_v55 = vand.u32 4294901760, %v179_v40  ;;  %v191_v56 = vsub.f32 %v1446_v28, %v190_v41  ;;  %v202_v57 = vand.u32 4294901760, %v1481_v45  ;;  %v1507_v58 = vsub.f32 %v96_v35, %v1483_v46 }
  0x22   :  { %163 = vmatpush.msra.mxu1 %v162_v37  ;;  %122 = vmatpush.msra.mxu0 %v1412_v11  ;;  %v197_v59 = vsub.f32 %v1463_v33, %v196_v48  ;;  %v1512_v60 = vand.u32 4294901760, %v93_v53  ;;  %v186_v62 = vand.u32 4294901760, %v185_v50  ;;  %v208_v63 = vand.u32 4294901760, %v1493_v51 }
  0x23   :  { %267 = vmatpush.msra.mxu2 %v1431_v19  ;;  %318 = vmatpush.msra.mxu3 %v1412_v11  ;;  %v1519_v0 = vsub.f32 %v95_v42, %v1495_v52  ;;  %v1522_v1 = vsub.f32 %v94_v47, %v1497_v54  ;;  %v192_v6 = vand.u32 4294901760, %v191_v56  ;;  %v203_v7 = vsub.f32 %v1481_v45, %v202_v57  ;;  %v461_v19 = vld [vmem:[#allocation7 + $0x40] sm:$0xff] }
  0x24   :  { %169 = vmatpush.msra.mxu1 %v168_v43  ;;  %124 = vmatpush.msra.mxu0 %v1424_v17  ;;  %v214_v8 = vand.u32 4294901760, %v1507_v58  ;;  %v1531_v12 = vand.u32 4294901760, %v92_v61  ;;  %v198_v13 = vand.u32 4294901760, %v197_v59  ;;  %v1534_v21 = vsub.f32 %v93_v53, %v1512_v60 }
  0x25   :  { %270 = vmatpush.msra.mxu2 %v1440_v25  ;;  %320 = vmatpush.msra.mxu3 %v1424_v17  ;;  %v209_v30 = vsub.f32 %v1493_v51, %v208_v63  ;;  %v220_v31 = vand.u32 4294901760, %v1519_v0  ;;  %v1543_v34 = vand.u32 4294901760, %v91_v2  ;;  %v1545_v35 = vand.u32 4294901760, %v90_v29 }
  0x26   :  { %175 = vmatpush.msra.mxu1 %v174_v49  ;;  %126 = vmatpush.msra.mxu0 %v1433_v20  ;;  %v226_v36 = vand.u32 4294901760, %v1522_v1  ;;  %v204_v37 = vand.u32 4294901760, %v203_v7  ;;  %v215_v38 = vsub.f32 %v1507_v58, %v214_v8  ;;  %v1555_v40 = vsub.f32 %v92_v61, %v1531_v12 }
  0x27   :  { %273 = vmatpush.msra.mxu2 %v1446_v28  ;;  %322 = vmatpush.msra.mxu3 %v1433_v20  ;;  %v144_v42 = vsub.f32 %v90_v29, %v1545_v35  ;;  %v210_v43 = vand.u32 4294901760, %v209_v30  ;;  %v221_v47 = vsub.f32 %v1519_v0, %v220_v31  ;;  %v232_v49 = vand.u32 4294901760, %v1534_v21 }
  0x28   :  { %181 = vmatpush.msra.mxu1 %v180_v55  ;;  %128 = vmatpush.msra.mxu0 %v1459_v32  ;;  %v1566_v50 = vsub.f32 %v91_v2, %v1543_v34  ;;  %v216_v53 = vand.u32 4294901760, %v215_v38  ;;  %v227_v55 = vsub.f32 %v1522_v1, %v226_v36  ;;  %v238_v56 = vand.u32 4294901760, %v1555_v40 }
  0x29   :  { %276 = vmatpush.msra.mxu2 %v1463_v33  ;;  %324 = vmatpush.msra.mxu3 %v1459_v32  ;;  %v145_v59 = vand.u32 4294901760, %v144_v42  ;;  %v222_v61 = vand.u32 4294901760, %v221_v47  ;;  %v466_v47 = vld [vmem:[#allocation7 + $0x68] sm:$0xff]  ;;  %v1608_v15 = vand.u32 4294901760, %v468_v14  ;;  %v460_v33 = vld [vmem:[#allocation7 + $0x38] sm:$0xff] }
  0x2a   :  { %187 = vmatpush.msra.mxu1 %v186_v62  ;;  %130 = vmatpush.msra.mxu0 %v1478_v44  ;;  %v233_v62 = vsub.f32 %v1534_v21, %v232_v49  ;;  %v244_v2 = vand.u32 4294901760, %v1566_v50  ;;  %v239_v7 = vsub.f32 %v1555_v40, %v238_v56  ;;  %v1612_v16 = vand.u32 4294901760, %v466_v47 }
  0x2b   :  { %279 = vmatpush.msra.mxu2 %v1481_v45  ;;  %326 = vmatpush.msra.mxu3 %v1478_v44  ;;  %v1687_v45 = vand.u32 4294901760, %v460_v33 }
  0x2c   :  { %193 = vmatpush.msra.mxu1 %v192_v6  ;;  %132 = vmatpush.msra.mxu0 %v1483_v46  ;;  %v228_v6 = vand.u32 4294901760, %v227_v55  ;;  %v234_v29 = vand.u32 4294901760, %v233_v62  ;;  %v245_v30 = vsub.f32 %v1566_v50, %v244_v2 }
  0x2d   :  { %282 = vmatpush.msra.mxu2 %v1493_v51  ;;  %328 = vmatpush.msra.mxu3 %v1483_v46  ;;  %v1702_v51 = vsub.f32 %v460_v33, %v1687_v45 }
  0x2e   :  { %199 = vmatpush.msra.mxu1 %v198_v13  ;;  %134 = vmatpush.msra.mxu0 %v1495_v52  ;;  %v146_v13 = vsub.f32 %v144_v42, %v145_v59 }
  0x2f   :  { %285 = vmatpush.msra.mxu2 %v1507_v58  ;;  %330 = vmatpush.msra.mxu3 %v1495_v52 }
  0x30   :  { %205 = vmatpush.msra.mxu1 %v204_v37  ;;  %136 = vmatpush.msra.mxu0 %v1497_v54  ;;  %v240_v37 = vand.u32 4294901760, %v239_v7  ;;  %v147_v38 = vand.u32 4294901760, %v146_v13  ;;  %v1648_v13 = vand.u32 4294901760, %v461_v19 }
  0x31   :  { %288 = vmatpush.msra.mxu2 %v1519_v0  ;;  %332 = vmatpush.msra.mxu3 %v1497_v54  ;;  %v454_v0 = vld [vmem:[#allocation7 + $0x8] sm:$0xff] }
  0x32   :  { %211 = vmatpush.msra.mxu1 %v210_v43  ;;  %138 = vmatpush.msra.mxu0 %v1512_v60  ;;  %v246_v43 = vand.u32 4294901760, %v245_v30 }
  0x33   :  { %291 = vmatpush.msra.mxu2 %v1522_v1  ;;  %334 = vmatpush.msra.mxu3 %v1512_v60  ;;  %v453_v1 = vld [vmem:[#allocation7] sm:$0xff] }
  0x34   :  { %217 = vmatpush.msra.mxu1 %v216_v53  ;;  %140 = vmatpush.msra.mxu0 %v1531_v12  ;;  %v463_v53 = vld [vmem:[#allocation7 + $0x50] sm:$0xff] }
  0x35   :  { %294 = vmatpush.msra.mxu2 %v1534_v21  ;;  %336 = vmatpush.msra.mxu3 %v1531_v12  ;;  %v1619_v55 = vand.u32 4294901760, %v463_v53 }
  0x36   :  { %223 = vmatpush.msra.mxu1 %v222_v61  ;;  %142 = vmatpush.msra.mxu0 %v1543_v34  ;;  %v1631_v61 = vsub.f32 %v466_v47, %v1612_v16 }
  0x37   :  { %297 = vmatpush.msra.mxu2 %v1555_v40  ;;  %338 = vmatpush.msra.mxu3 %v1543_v34  ;;  %v1653_v30 = vsub.f32 %v463_v53, %v1619_v55 }
  0x38   :  { %349 = vmatpush.msrb.mxu0 %v154_v22  ;;  %229 = vmatpush.msra.mxu1 %v228_v6  ;;  %v467_v22 = vld [vmem:[#allocation7 + $0x70] sm:$0xff]  ;;  %v528_v7 = vand.u32 4294901760, %v1631_v61 }
  0x39   :  { %300 = vmatpush.msra.mxu2 %v1566_v50  ;;  %342 = vmatmul.f32.vlgmr.msra.gmra.mxu3 %v145_v59 }
  0x3a   :  { %353 = vmatpush.msrb.mxu0 %v160_v23  ;;  %235 = vmatpush.msra.mxu1 %v234_v29  ;;  %v1610_v23 = vand.u32 4294901760, %v467_v22 }
  0x3b   :  { %303 = vmatmul.f32.vlgmr.msra.gmra.mxu2 %v144_v42  ;;  %148 = vmatmul.f32.vlgmr.msra.gmra.mxu0 %v147_v38  ;;  %v464_v42 = vld [vmem:[#allocation7 + $0x58] sm:$0xff] }
  0x3c   :  { %357 = vmatpush.msrb.mxu0 %v166_v24  ;;  %241 = vmatpush.msra.mxu1 %v240_v37  ;;  %v465_v24 = vld [vmem:[#allocation7 + $0x60] sm:$0xff]  ;;  %v1628_v59 = vsub.f32 %v467_v22, %v1610_v23  ;;  %v529_v37 = vsub.f32 %v1631_v61, %v528_v7 }
  0x3d   :  { %v1615_v18 = vand.u32 4294901760, %v465_v24  ;;  %474 = vmatpush.msrb.mxu2 %v1608_v15 }
  0x3e   :  { %361 = vmatpush.msrb.mxu0 %v172_v26  ;;  %247 = vmatpush.msra.mxu1 %v246_v43  ;;  %v1617_v26 = vand.u32 4294901760, %v464_v42  ;;  %v1676_v43 = vsub.f32 %v461_v19, %v1648_v13  ;;  %v530_v53 = vand.u32 4294901760, %v529_v37 }
  0x3f   :  { %249 = vmatmul.f32.vlgmr.msra.gmra.mxu1 %v1545_v35  ;;  %v1636_v6 = vsub.f32 %v465_v24, %v1615_v18  ;;  %476 = vmatpush.msrb.mxu2 %v1610_v23  ;;  %v546_v24 = vand.u32 4294901760, %v1653_v30 }
  0x40   :  { %416 = vmatpush.msrb.mxu1 %v1402_v3  ;;  %365 = vmatpush.msrb.mxu0 %v178_v27  ;;  %v462_v3 = vld [vmem:[#allocation7 + $0x48] sm:$0xff]  ;;  %v1625_v27 = vsub.f32 %v468_v14, %v1608_v15 }
  0x41   :  { %v1633_v62 = vand.u32 4294901760, %v462_v3  ;;  %v534_v29 = vand.u32 4294901760, %v1636_v6  ;;  %478 = vmatpush.msrb.mxu2 %v1612_v16  ;;  %v458_v14 = vld [vmem:[#allocation7 + $0x28] sm:$0xff] }
  0x42   :  { %418 = vmatpush.msrb.mxu1 %v1404_v4  ;;  %369 = vmatpush.msrb.mxu0 %v184_v39  ;;  %v1640_v4 = vsub.f32 %v464_v42, %v1617_v26  ;;  %v516_v25 = vand.u32 4294901760, %v1625_v27  ;;  %v522_v39 = vand.u32 4294901760, %v1628_v59  ;;  %v457_v42 = vld [vmem:[#allocation7 + $0x20] sm:$0xff]  ;;  %v1695_v19 = vand.u32 4294901760, %v458_v14 }
  0x43   :  { %v535_v47 = vsub.f32 %v1636_v6, %v534_v29  ;;  %480 = vmatpush.msrb.mxu2 %v1615_v18 }
  0x44   :  { %420 = vmatpush.msrb.mxu1 %v1406_v5  ;;  %373 = vmatpush.msrb.mxu0 %v190_v41  ;;  %v517_v5 = vsub.f32 %v1625_v27, %v516_v25  ;;  %v523_v28 = vsub.f32 %v1628_v59, %v522_v39  ;;  %v1665_v41 = vsub.f32 %v462_v3, %v1633_v62 }
  0x45   :  { %482 = vmatpush.msrb.mxu2 %v1617_v26 }
  0x46   :  { %422 = vmatpush.msrb.mxu1 %v1408_v9  ;;  %377 = vmatpush.msrb.mxu0 %v196_v48  ;;  %v540_v9 = vand.u32 4294901760, %v1640_v4  ;;  %v459_v48 = vld [vmem:[#allocation7 + $0x30] sm:$0xff]  ;;  %v518_v38 = vand.u32 4294901760, %v517_v5  ;;  %v524_v22 = vand.u32 4294901760, %v523_v28  ;;  %v536_v5 = vand.u32 4294901760, %v535_v47 }
  0x47   :  { %v547_v28 = vsub.f32 %v1653_v30, %v546_v24  ;;  %484 = vmatpush.msrb.mxu2 %v1619_v55 }
  0x48   :  { %424 = vmatpush.msrb.mxu1 %v1410_v10  ;;  %381 = vmatpush.msrb.mxu0 %v202_v57  ;;  %v552_v10 = vand.u32 4294901760, %v1665_v41  ;;  %v1689_v57 = vand.u32 4294901760, %v459_v48  ;;  %v541_v3 = vsub.f32 %v1640_v4, %v540_v9 }
  0x49   :  { %519 = vmatpush.msrb.mxu3 %v518_v38  ;;  %v564_v38 = vand.u32 4294901760, %v1702_v51  ;;  %486 = vmatpush.msrb.mxu2 %v1633_v62 }
  0x4a   :  { %426 = vmatpush.msrb.mxu1 %v1412_v11  ;;  %385 = vmatpush.msrb.mxu0 %v208_v63  ;;  %v558_v11 = vand.u32 4294901760, %v1676_v43  ;;  %v456_v63 = vld [vmem:[#allocation7 + $0x18] sm:$0xff]  ;;  %v1709_v37 = vsub.f32 %v459_v48, %v1689_v57  ;;  %v553_v58 = vsub.f32 %v1665_v41, %v552_v10  ;;  %v542_v33 = vand.u32 4294901760, %v541_v3 }
  0x4b   :  { %525 = vmatpush.msrb.mxu3 %v524_v22  ;;  %v1722_v48 = vsub.f32 %v458_v14, %v1695_v19  ;;  %v1724_v22 = vand.u32 4294901760, %v456_v63  ;;  %488 = vmatpush.msrb.mxu2 %v1648_v13 }
  0x4c   :  { %428 = vmatpush.msrb.mxu1 %v1424_v17  ;;  %389 = vmatpush.msrb.mxu0 %v214_v8  ;;  %v1711_v17 = vand.u32 4294901760, %v457_v42  ;;  %v455_v8 = vld [vmem:[#allocation7 + $0x10] sm:$0xff]  ;;  %v570_v47 = vand.u32 4294901760, %v1709_v37 }
  0x4d   :  { %531 = vmatpush.msrb.mxu3 %v530_v53  ;;  %v1737_v53 = vand.u32 4294901760, %v455_v8  ;;  %v576_v3 = vand.u32 4294901760, %v1722_v48  ;;  %490 = vmatpush.msrb.mxu2 %v1687_v45 }
  0x4e   :  { %430 = vmatpush.msrb.mxu1 %v1433_v20  ;;  %393 = vmatpush.msrb.mxu0 %v220_v31  ;;  %v559_v20 = vsub.f32 %v1676_v43, %v558_v11  ;;  %v548_v31 = vand.u32 4294901760, %v547_v28  ;;  %v1735_v14 = vsub.f32 %v457_v42, %v1711_v17  ;;  %v1748_v42 = vsub.f32 %v456_v63, %v1724_v22 }
  0x4f   :  { %537 = vmatpush.msrb.mxu3 %v536_v5  ;;  %v1750_v5 = vand.u32 4294901760, %v454_v0  ;;  %v571_v21 = vsub.f32 %v1709_v37, %v570_v47  ;;  %492 = vmatpush.msrb.mxu2 %v1689_v57  ;;  %v1761_v63 = vsub.f32 %v455_v8, %v1737_v53  ;;  %v1763_v28 = vand.u32 4294901760, %v453_v1 }
  0x50   :  { %432 = vmatpush.msrb.mxu1 %v1459_v32  ;;  %397 = vmatpush.msrb.mxu0 %v226_v36  ;;  %v554_v32 = vand.u32 4294901760, %v553_v58  ;;  %v565_v36 = vsub.f32 %v1702_v51, %v564_v38  ;;  %v577_v40 = vsub.f32 %v1722_v48, %v576_v3 }
  0x51   :  { %543 = vmatpush.msrb.mxu3 %v542_v33  ;;  %v1774_v58 = vsub.f32 %v454_v0, %v1750_v5  ;;  %494 = vmatpush.msrb.mxu2 %v1695_v19  ;;  %v1784_v8 = vsub.f32 %v453_v1, %v1763_v28 }
  0x52   :  { %434 = vmatpush.msrb.mxu1 %v1478_v44  ;;  %401 = vmatpush.msrb.mxu0 %v232_v49  ;;  %v560_v44 = vand.u32 4294901760, %v559_v20  ;;  %v582_v49 = vand.u32 4294901760, %v1735_v14 }
  0x53   :  { %549 = vmatpush.msrb.mxu3 %v548_v31  ;;  %v600_v20 = vand.u32 4294901760, %v1774_v58  ;;  %496 = vmatpush.msrb.mxu2 %v1711_v17  ;;  %v606_v31 = vand.u32 4294901760, %v1784_v8 }
  0x54   :  { %436 = vmatpush.msrb.mxu1 %v1483_v46  ;;  %405 = vmatpush.msrb.mxu0 %v238_v56  ;;  %v566_v46 = vand.u32 4294901760, %v565_v36  ;;  %v588_v56 = vand.u32 4294901760, %v1748_v42  ;;  %v583_v50 = vsub.f32 %v1735_v14, %v582_v49 }
  0x55   :  { %555 = vmatpush.msrb.mxu3 %v554_v32  ;;  %498 = vmatpush.msrb.mxu2 %v1724_v22  ;;  %v601_v32 = vsub.f32 %v1774_v58, %v600_v20 }
  0x56   :  { %438 = vmatpush.msrb.mxu1 %v1495_v52  ;;  %409 = vmatpush.msrb.mxu0 %v244_v2  ;;  %v572_v52 = vand.u32 4294901760, %v571_v21  ;;  %v594_v2 = vand.u32 4294901760, %v1761_v63  ;;  %v589_v33 = vsub.f32 %v1748_v42, %v588_v56  ;;  %v584_v0 = vand.u32 4294901760, %v583_v50 }
  0x57   :  { %411 = vmatmul.f32.vlgmr.msrb.gmra.mxu0 %v1545_v35  ;;  %561 = vmatpush.msrb.mxu3 %v560_v44 }
  0x58   :  { %440 = vmatpush.msrb.mxu1 %v1497_v54  ;;  %617 = vmatpush.msra.mxu0 %v1625_v27  ;;  %v578_v54 = vand.u32 4294901760, %v577_v40  ;;  %v821_v40 = vld [vmem:[#allocation8 + $0x30] sm:$0xff] }
  0x59   :  { %567 = vmatpush.msrb.mxu3 %v566_v46  ;;  %500 = vmatpush.msrb.mxu2 %v1737_v53  ;;  %v822_v46 = vld [vmem:[#allocation8 + $0x38] sm:$0xff] }
  0x5a   :  { %442 = vmatpush.msrb.mxu1 %v1512_v60  ;;  %620 = vmatpush.msra.mxu0 %v1628_v59  ;;  %v595_v60 = vsub.f32 %v1761_v63, %v594_v2 }
  0x5b   :  { %573 = vmatpush.msrb.mxu3 %v572_v52  ;;  %502 = vmatpush.msrb.mxu2 %v1750_v5 }
  0x5c   :  { %444 = vmatpush.msrb.mxu1 %v1531_v12  ;;  %623 = vmatpush.msra.mxu0 %v1631_v61  ;;  %v590_v12 = vand.u32 4294901760, %v589_v33  ;;  %v596_v1 = vand.u32 4294901760, %v595_v60  ;;  %v830_v61 = vld [vmem:[#allocation8 + $0x78] sm:$0xff]  ;;  %v819_v33 = vld [vmem:[#allocation8 + $0x20] sm:$0xff]  ;;  %v1958_v60 = vand.u32 4294901760, %v822_v46 }
  0x5d   :  { %579 = vmatpush.msrb.mxu3 %v578_v54  ;;  %504 = vmatpush.msrb.mxu2 %v1763_v28 }
  0x5e   :  { %446 = vmatpush.msrb.mxu1 %v1543_v34  ;;  %626 = vmatpush.msra.mxu0 %v1636_v6  ;;  %v607_v34 = vsub.f32 %v1784_v8, %v606_v31  ;;  %v828_v6 = vld [vmem:[#allocation8 + $0x68] sm:$0xff] }
  0x5f   :  { %448 = vmatmul.f32.vlgmr.msrb.gmra.mxu1 %v1545_v35  ;;  %585 = vmatpush.msrb.mxu3 %v584_v0  ;;  %v602_v35 = vand.u32 4294901760, %v601_v32 }
  0x60   :  { %670 = vmatpush.msra.mxu1 %v1608_v15  ;;  %629 = vmatpush.msra.mxu0 %v1640_v4  ;;  %v608_v36 = vand.u32 4294901760, %v607_v34  ;;  %v1891_v4 = vand.u32 4294901760, %v830_v61 }
  0x61   :  { %591 = vmatpush.msrb.mxu3 %v590_v12  ;;  %711 = vmatpush.msra.mxu2 %v516_v25 }
  0x62   :  { %672 = vmatpush.msra.mxu1 %v1610_v23  ;;  %632 = vmatpush.msra.mxu0 %v1653_v30 }
  0x63   :  { %597 = vmatpush.msrb.mxu3 %v596_v1  ;;  %715 = vmatpush.msra.mxu2 %v522_v39  ;;  %v1895_v39 = vand.u32 4294901760, %v828_v6 }
  0x64   :  { %674 = vmatpush.msra.mxu1 %v1612_v16  ;;  %635 = vmatpush.msra.mxu0 %v1665_v41 }
  0x65   :  { %603 = vmatpush.msrb.mxu3 %v602_v35  ;;  %719 = vmatpush.msra.mxu2 %v528_v7  ;;  %v827_v7 = vld [vmem:[#allocation8 + $0x60] sm:$0xff]  ;;  %v818_v35 = vld [vmem:[#allocation8 + $0x18] sm:$0xff] }
  0x66   :  { %676 = vmatpush.msra.mxu1 %v1615_v18  ;;  %638 = vmatpush.msra.mxu0 %v1676_v43  ;;  %v1897_v41 = vand.u32 4294901760, %v827_v7 }
  0x67   :  { %609 = vmatpush.msrb.mxu3 %v608_v36  ;;  %723 = vmatpush.msra.mxu2 %v534_v29  ;;  %v825_v29 = vld [vmem:[#allocation8 + $0x50] sm:$0xff] }
  0x68   :  { %678 = vmatpush.msra.mxu1 %v1617_v26  ;;  %641 = vmatpush.msra.mxu0 %v1702_v51  ;;  %v1901_v43 = vand.u32 4294901760, %v825_v29 }
  0x69   :  { %778 = vmatpush.msra.mxu3 %v1608_v15  ;;  %727 = vmatpush.msra.mxu2 %v540_v9  ;;  %v1207_v15 = vld [vmem:[%s2100_s2] ss:$0 sm:$0xff] }
  0x6a   :  { %680 = vmatpush.msra.mxu1 %v1619_v55  ;;  %644 = vmatpush.msra.mxu0 %v1709_v37  ;;  %v1916_v37 = vsub.f32 %v827_v7, %v1897_v41 }
  0x6b   :  { %780 = vmatpush.msra.mxu3 %v1610_v23  ;;  %731 = vmatpush.msra.mxu2 %v546_v24  ;;  %v824_v24 = vld [vmem:[#allocation8 + $0x48] sm:$0xff] }
  0x6c   :  { %682 = vmatpush.msra.mxu1 %v1633_v62  ;;  %647 = vmatpush.msra.mxu0 %v1722_v48  ;;  %v1913_v51 = vand.u32 4294901760, %v824_v24 }
  0x6d   :  { %782 = vmatpush.msra.mxu3 %v1612_v16  ;;  %735 = vmatpush.msra.mxu2 %v552_v10  ;;  %v823_v10 = vld [vmem:[#allocation8 + $0x40] sm:$0xff] }
  0x6e   :  { %684 = vmatpush.msra.mxu1 %v1648_v13  ;;  %650 = vmatpush.msra.mxu0 %v1735_v14  ;;  %v1924_v48 = vand.u32 4294901760, %v823_v10 }
  0x6f   :  { %784 = vmatpush.msra.mxu3 %v1615_v18  ;;  %739 = vmatpush.msra.mxu2 %v558_v11  ;;  %v1910_v11 = vsub.f32 %v828_v6, %v1895_v39 }
  0x70   :  { %686 = vmatpush.msra.mxu1 %v1687_v45  ;;  %653 = vmatpush.msra.mxu0 %v1748_v42  ;;  %v1932_v42 = vsub.f32 %v824_v24, %v1913_v51 }
  0x71   :  { %786 = vmatpush.msra.mxu3 %v1617_v26  ;;  %743 = vmatpush.msra.mxu2 %v564_v38  ;;  %v1922_v38 = vsub.f32 %v825_v29, %v1901_v43  ;;  %v890_v14 = vand.u32 4294901760, %v1910_v11 }
  0x72   :  { %688 = vmatpush.msra.mxu1 %v1689_v57  ;;  %656 = vmatpush.msra.mxu0 %v1761_v63  ;;  %v914_v54 = vand.u32 4294901760, %v1932_v42 }
  0x73   :  { %788 = vmatpush.msra.mxu3 %v1619_v55  ;;  %747 = vmatpush.msra.mxu2 %v570_v47  ;;  %v891_v21 = vsub.f32 %v1910_v11, %v890_v14  ;;  %v908_v63 = vand.u32 4294901760, %v1922_v38 }
  0x74   :  { %690 = vmatpush.msra.mxu1 %v1695_v19  ;;  %659 = vmatpush.msra.mxu0 %v1774_v58 }
  0x75   :  { %790 = vmatpush.msra.mxu3 %v1633_v62  ;;  %751 = vmatpush.msra.mxu2 %v576_v3  ;;  %v829_v62 = vld [vmem:[#allocation8 + $0x70] sm:$0xff]  ;;  %v896_v3 = vand.u32 4294901760, %v1916_v37  ;;  %v909_v32 = vsub.f32 %v1922_v38, %v908_v63 }
  0x76   :  { %692 = vmatpush.msra.mxu1 %v1711_v17  ;;  %662 = vmatpush.msra.mxu0 %v1784_v8  ;;  %v1893_v25 = vand.u32 4294901760, %v829_v62 }
  0x77   :  { %792 = vmatpush.msra.mxu3 %v1648_v13  ;;  %755 = vmatpush.msra.mxu2 %v582_v49  ;;  %v826_v13 = vld [vmem:[#allocation8 + $0x58] sm:$0xff]  ;;  %v897_v50 = vsub.f32 %v1916_v37, %v896_v3  ;;  %v910_v6 = vand.u32 4294901760, %v909_v32 }
  0x78   :  { %694 = vmatpush.msra.mxu1 %v1724_v22  ;;  %v1899_v9 = vand.u32 4294901760, %v826_v13  ;;  %836 = vmatpush.msrb.mxu0 %v1891_v4 }
  0x79   :  { %794 = vmatpush.msra.mxu3 %v1687_v45  ;;  %759 = vmatpush.msra.mxu2 %v588_v56  ;;  %v898_v36 = vand.u32 4294901760, %v897_v50 }
  0x7a   :  { %696 = vmatpush.msra.mxu1 %v1737_v53  ;;  %838 = vmatpush.msrb.mxu0 %v1893_v25 }
  0x7b   :  { %796 = vmatpush.msra.mxu3 %v1689_v57  ;;  %763 = vmatpush.msra.mxu2 %v594_v2  ;;  %v1904_v57 = vsub.f32 %v830_v61, %v1891_v4  ;;  %v820_v2 = vld [vmem:[#allocation8 + $0x28] sm:$0xff]  ;;  %v1985_v61 = vand.u32 4294901760, %v818_v35 }
  0x7c   :  { %698 = vmatpush.msra.mxu1 %v1750_v5  ;;  %840 = vmatpush.msrb.mxu0 %v1895_v39  ;;  %v1966_v34 = vand.u32 4294901760, %v820_v2 }
  0x7d   :  { %798 = vmatpush.msra.mxu3 %v1695_v19  ;;  %767 = vmatpush.msra.mxu2 %v600_v20  ;;  %v1907_v19 = vsub.f32 %v829_v62, %v1893_v25  ;;  %v892_v20 = vand.u32 4294901760, %v891_v21 }
  0x7e   :  { %700 = vmatpush.msra.mxu1 %v1763_v28  ;;  %842 = vmatpush.msrb.mxu0 %v1897_v41 }
  0x7f   :  { %800 = vmatpush.msra.mxu3 %v1711_v17  ;;  %771 = vmatpush.msra.mxu2 %v606_v31  ;;  %v1919_v17 = vsub.f32 %v826_v13, %v1899_v9  ;;  %v884_v47 = vand.u32 4294901760, %v1907_v19  ;;  %v1960_v31 = vand.u32 4294901760, %v821_v40 }
  0x80   :  { %844 = vmatpush.msrb.mxu0 %v1899_v9 }
  0x81   :  { %802 = vmatpush.msra.mxu3 %v1724_v22  ;;  %v878_v22 = vand.u32 4294901760, %v1904_v57  ;;  %v885_v44 = vsub.f32 %v1907_v19, %v884_v47  ;;  %v902_v49 = vand.u32 4294901760, %v1919_v17 }
  0x82   :  { %846 = vmatpush.msrb.mxu0 %v1901_v43 }
  0x83   :  { %804 = vmatpush.msra.mxu3 %v1737_v53  ;;  %v886_v52 = vand.u32 4294901760, %v885_v44  ;;  %v903_v0 = vsub.f32 %v1919_v17, %v902_v49 }
  0x84   :  { %848 = vmatpush.msrb.mxu0 %v1913_v51 }
  0x85   :  { %806 = vmatpush.msra.mxu3 %v1750_v5  ;;  %v879_v5 = vsub.f32 %v1904_v57, %v878_v22 }
  0x86   :  { %850 = vmatpush.msrb.mxu0 %v1924_v48 }
  0x87   :  { %808 = vmatpush.msra.mxu3 %v1763_v28  ;;  %v1947_v28 = vsub.f32 %v823_v10, %v1924_v48  ;;  %v880_v58 = vand.u32 4294901760, %v879_v5 }
  0x88   :  { %852 = vmatpush.msrb.mxu0 %v1958_v60 }
  0x89   :  { %881 = vmatpush.msrb.mxu1 %v880_v58  ;;  %v920_v1 = vand.u32 4294901760, %v1947_v28 }
  0x8a   :  { %854 = vmatpush.msrb.mxu0 %v1960_v31 }
  0x8b   :  { %887 = vmatpush.msrb.mxu1 %v886_v52  ;;  %v921_v7 = vsub.f32 %v1947_v28, %v920_v1 }
  0x8c   :  { %856 = vmatpush.msrb.mxu0 %v1966_v34 }
  0x8d   :  { %893 = vmatpush.msrb.mxu1 %v892_v20  ;;  %v922_v44 = vand.u32 4294901760, %v921_v7 }
  0x8f   :  { %899 = vmatpush.msrb.mxu1 %v898_v36 }
  0xb8   :  { %v149_v23 = vpop.f32.mrf.mxu0 }
  0xb9   :  { %v150_v16 = vadd.f32 %v1207_v15, %v149_v23  ;;  %v1969_v15 = vsub.f32 %v822_v46, %v1958_v60  ;;  %v1973_v23 = vsub.f32 %v821_v40, %v1960_v31 }
  0xbb   :  { %v932_v13 = vand.u32 4294901760, %v1973_v23 }
  0xbc   :  { %v250_v18 = vpop.f32.mrf.mxu1  ;;  %v343_v59 = vpop.f32.mrf.mxu3 }
  0xbd   :  { %v251_v26 = vadd.f32 %v250_v18, %v150_v16  ;;  %v1975_v16 = vand.u32 4294901760, %v819_v33  ;;  %v933_v21 = vsub.f32 %v1973_v23, %v932_v13 }
  0xbe   :  { %v304_v55 = vpop.f32.mrf.mxu2 }
  0xbf   :  { %v305_v27 = vadd.f32 %v304_v55, %v251_v26  ;;  %v915_v26 = vsub.f32 %v1932_v42, %v914_v54  ;;  %v904_v55 = vand.u32 4294901760, %v903_v0  ;;  %v1993_v29 = vsub.f32 %v819_v33, %v1975_v16  ;;  %858 = vmatpush.msrb.mxu0 %v1975_v16 }
  0xc0   :  { %v934_v50 = vand.u32 4294901760, %v933_v21 }
  0xc1   :  { %v344_v30 = vadd.f32 %v343_v59, %v305_v27  ;;  %v926_v27 = vand.u32 4294901760, %v1969_v15  ;;  %v1983_v59 = vsub.f32 %v820_v2, %v1966_v34  ;;  %905 = vmatpush.msrb.mxu1 %v904_v55  ;;  %v916_v24 = vand.u32 4294901760, %v915_v26  ;;  %860 = vmatpush.msrb.mxu0 %v1985_v61  ;;  %v815_v26 = vld [vmem:[#allocation8] sm:$0xff] }
  0xc2   :  { %v944_v46 = vand.u32 4294901760, %v1993_v29 }
  0xc3   :  { %v927_v10 = vsub.f32 %v1969_v15, %v926_v27  ;;  %911 = vmatpush.msrb.mxu1 %v910_v6  ;;  %v865_v6 = vand.u32 4294901760, %v815_v26 }
  0xc4   :  { %v945_v2 = vsub.f32 %v1993_v29, %v944_v46 }
  0xc5   :  { %917 = vmatpush.msrb.mxu1 %v916_v24  ;;  %v967_v24 = vsub.f32 %v815_v26, %v865_v6 }
  0xc6   :  { %v946_v20 = vand.u32 4294901760, %v945_v2 }
  0xc7   :  { %923 = vmatpush.msrb.mxu1 %v922_v44  ;;  %v968_v44 = vand.u32 4294901760, %v967_v24 }
  0xd4   :  { %v412_v45 = vpop.f32.mrf.mxu0 }
  0xd5   :  { %v413_v53 = vadd.f32 %v412_v45, %v344_v30  ;;  %v938_v45 = vand.u32 4294901760, %v1983_v59 }
  0xd7   :  { %v939_v58 = vsub.f32 %v1983_v59, %v938_v45 }
  0xdc   :  { %v449_v56 = vpop.f32.mrf.mxu1 }
  0xdd   :  { %v450_v8 = vadd.f32 %v449_v56, %v413_v53  ;;  %v2002_v53 = vsub.f32 %v818_v35, %v1985_v61  ;;  %v928_v56 = vand.u32 4294901760, %v927_v10  ;;  %v816_v35 = vld [vmem:[#allocation8 + $0x8] sm:$0xff] }
  0xdf   :  { %v452_v12 = vmax.f32 %v450_v8, 0.0  ;;  %v950_v52 = vand.u32 4294901760, %v2002_v53  ;;  %929 = vmatpush.msrb.mxu1 %v928_v56  ;;  %v940_v8 = vand.u32 4294901760, %v939_v58 }
  0xe1   :  { %v505_v18 = vand.u32 4294901760, %v452_v12  ;;  %v951_v33 = vsub.f32 %v2002_v53, %v950_v52  ;;  %935 = vmatpush.msrb.mxu1 %v934_v50 }
  0xe3   :  { %v506_v62 = vsub.f32 %v452_v12, %v505_v18  ;;  %611 = vmatmul.f32.vlgmr.msrb.gmra.mxu3 %v505_v18  ;;  %941 = vmatpush.msrb.mxu1 %v940_v8  ;;  %v952_v0 = vand.u32 4294901760, %v951_v33  ;;  %v817_v12 = vld [vmem:[#allocation8 + $0x10] sm:$0xff] }
  0xe4   :  { %1032 = vmatpush.msrb.mxu3 %v1891_v4  ;;  %v861_v32 = vand.u32 4294901760, %v817_v12 }
  0xe5   :  { %665 = vmatmul.f32.vlgmr.msra.gmra.mxu0 %v506_v62  ;;  %v507_v30 = vand.u32 4294901760, %v506_v62  ;;  %947 = vmatpush.msrb.mxu1 %v946_v20 }
  0xe6   :  { %1034 = vmatpush.msrb.mxu3 %v1893_v25  ;;  %v955_v36 = vsub.f32 %v817_v12, %v861_v32  ;;  %862 = vmatpush.msrb.mxu0 %v861_v32 }
  0xe7   :  { %704 = vmatmul.f32.vlgmr.msra.gmra.mxu1 %v507_v30  ;;  %v508_v5 = vsub.f32 %v506_v62, %v507_v30 }
  0xe8   :  { %1036 = vmatpush.msrb.mxu3 %v1895_v39  ;;  %953 = vmatpush.msrb.mxu1 %v952_v0  ;;  %v956_v55 = vand.u32 4294901760, %v955_v36 }
  0xe9   :  { %v509_v40 = vand.u32 4294901760, %v508_v5 }
  0xea   :  { %1038 = vmatpush.msrb.mxu3 %v1897_v41  ;;  %v957_v7 = vsub.f32 %v955_v36, %v956_v55 }
  0xeb   :  { %510 = vmatmul.f32.vlgmr.msrb.gmra.mxu2 %v509_v40  ;;  %810 = vmatmul.f32.vlgmr.msra.gmra.mxu3 %v505_v18  ;;  %v969_v40 = vsub.f32 %v967_v24, %v968_v44 }
  0xec   :  { %979 = vmatpush.msrb.mxu2 %v1904_v57  ;;  %1040 = vmatpush.msrb.mxu3 %v1899_v9  ;;  %v958_v10 = vand.u32 4294901760, %v957_v7 }
  0xed   :  { %v970_v56 = vand.u32 4294901760, %v969_v40 }
  0xee   :  { %982 = vmatpush.msrb.mxu2 %v1907_v19  ;;  %1042 = vmatpush.msrb.mxu3 %v1901_v43 }
  0xef   :  { %959 = vmatpush.msrb.mxu1 %v958_v10 }
  0xf0   :  { %985 = vmatpush.msrb.mxu2 %v1910_v11  ;;  %1044 = vmatpush.msrb.mxu3 %v1913_v51 }
  0xf2   :  { %988 = vmatpush.msrb.mxu2 %v1916_v37  ;;  %1046 = vmatpush.msrb.mxu3 %v1924_v48 }
  0xf3   :  { %773 = vmatmul.f32.vlgmr.msra.gmra.mxu2 %v505_v18  ;;  %v863_v18 = vand.u32 4294901760, %v816_v35 }
  0xf4   :  { %991 = vmatpush.msrb.mxu2 %v1919_v17  ;;  %1048 = vmatpush.msrb.mxu3 %v1958_v60 }
  0xf5   :  { %v961_v62 = vsub.f32 %v816_v35, %v863_v18  ;;  %864 = vmatpush.msrb.mxu0 %v863_v18 }
  0xf6   :  { %994 = vmatpush.msrb.mxu2 %v1922_v38  ;;  %1050 = vmatpush.msrb.mxu3 %v1960_v31 }
  0xf7   :  { %v962_v30 = vand.u32 4294901760, %v961_v62  ;;  %866 = vmatpush.msrb.mxu0 %v865_v6 }
  0xf8   :  { %997 = vmatpush.msrb.mxu2 %v1932_v42  ;;  %1052 = vmatpush.msrb.mxu3 %v1966_v34 }
  0xf9   :  { %1073 = vmatpush.msra.mxu0 %v878_v22  ;;  %v963_v5 = vsub.f32 %v961_v62, %v962_v30 }
  0xfa   :  { %1000 = vmatpush.msrb.mxu2 %v1947_v28  ;;  %1054 = vmatpush.msrb.mxu3 %v1975_v16 }
  0xfb   :  { %1077 = vmatpush.msra.mxu0 %v884_v47  ;;  %v964_v21 = vand.u32 4294901760, %v963_v5 }
  0xfc   :  { %1003 = vmatpush.msrb.mxu2 %v1969_v15  ;;  %1056 = vmatpush.msrb.mxu3 %v1985_v61 }
  0xfd   :  { %1081 = vmatpush.msra.mxu0 %v890_v14  ;;  %965 = vmatpush.msrb.mxu1 %v964_v21 }
  0xfe   :  { %1006 = vmatpush.msrb.mxu2 %v1973_v23  ;;  %1058 = vmatpush.msrb.mxu3 %v861_v32 }
  0xff   :  { %1085 = vmatpush.msra.mxu0 %v896_v3  ;;  %971 = vmatpush.msrb.mxu1 %v970_v56 }
 0x100   :  { %1009 = vmatpush.msrb.mxu2 %v1983_v59  ;;  %1060 = vmatpush.msrb.mxu3 %v863_v18 }
 0x101   :  { %1140 = vmatpush.msra.mxu1 %v1891_v4  ;;  %1089 = vmatpush.msra.mxu0 %v902_v49  ;;  %v1208_v4 = vld [vmem:[%s2102_s4] ss:$0 sm:$0xff] }
 0x102   :  { %1012 = vmatpush.msrb.mxu2 %v1993_v29  ;;  %1062 = vmatpush.msrb.mxu3 %v865_v6  ;;  %v1209_v49 = vld [vmem:[%s2104_s6] ss:$0 sm:$0xff] }
 0x103   :  { %1142 = vmatpush.msra.mxu1 %v1893_v25  ;;  %1093 = vmatpush.msra.mxu0 %v908_v63 }
 0x104   :  { %1015 = vmatpush.msrb.mxu2 %v2002_v53 }
 0x105   :  { %1144 = vmatpush.msra.mxu1 %v1895_v39  ;;  %1097 = vmatpush.msra.mxu0 %v914_v54 }
 0x106   :  { %1018 = vmatpush.msrb.mxu2 %v955_v36 }
 0x107   :  { %1146 = vmatpush.msra.mxu1 %v1897_v41  ;;  %1101 = vmatpush.msra.mxu0 %v920_v1 }
 0x108   :  { %1021 = vmatpush.msrb.mxu2 %v961_v62 }
 0x109   :  { %1148 = vmatpush.msra.mxu1 %v1899_v9  ;;  %1105 = vmatpush.msra.mxu0 %v926_v27 }
 0x10a   :  { %1024 = vmatpush.msrb.mxu2 %v967_v24 }
 0x10b   :  { %1150 = vmatpush.msra.mxu1 %v1901_v43  ;;  %1109 = vmatpush.msra.mxu0 %v932_v13 }
 0x10d   :  { %1152 = vmatpush.msra.mxu1 %v1913_v51  ;;  %1113 = vmatpush.msra.mxu0 %v938_v45 }
 0x10f   :  { %1154 = vmatpush.msra.mxu1 %v1924_v48  ;;  %1117 = vmatpush.msra.mxu0 %v944_v46 }
 0x111   :  { %1156 = vmatpush.msra.mxu1 %v1958_v60  ;;  %1121 = vmatpush.msra.mxu0 %v950_v52 }
 0x113   :  { %1158 = vmatpush.msra.mxu1 %v1960_v31  ;;  %1125 = vmatpush.msra.mxu0 %v956_v55 }
 0x115   :  { %1160 = vmatpush.msra.mxu1 %v1966_v34  ;;  %1129 = vmatpush.msra.mxu0 %v962_v30 }
 0x117   :  { %1162 = vmatpush.msra.mxu1 %v1975_v16  ;;  %1133 = vmatpush.msra.mxu0 %v968_v44 }
 0x119   :  { %1164 = vmatpush.msra.mxu1 %v1985_v61 }
 0x11b   :  { %1166 = vmatpush.msra.mxu1 %v861_v32 }
 0x11d   :  { %1168 = vmatpush.msra.mxu1 %v863_v18 }
 0x11f   :  { %1170 = vmatpush.msra.mxu1 %v865_v6 }
 0x162   :  { %v666_v43 = vpop.f32.mrf.mxu0 }
 0x164   :  { %v705_v19 = vpop.f32.mrf.mxu1 }
 0x166   :  { %v612_v25 = vpop.f32.mrf.mxu3 }
 0x16e   :  { %v511_v39 = vpop.f32.mrf.mxu2  ;;  %v811_v17 = vpop.f32.mrf.mxu3 }
 0x16f   :  { %v512_v41 = vadd.f32 %v1208_v4, %v511_v39 }
 0x171   :  { %v613_v9 = vadd.f32 %v612_v25, %v512_v41 }
 0x173   :  { %v667_v57 = vadd.f32 %v666_v43, %v613_v9 }
 0x175   :  { %v706_v11 = vadd.f32 %v705_v19, %v667_v57 }
 0x176   :  { %v774_v51 = vpop.f32.mrf.mxu2 }
 0x177   :  { %v775_v37 = vadd.f32 %v774_v51, %v706_v11 }
 0x179   :  { %v812_v38 = vadd.f32 %v811_v17, %v775_v37 }
 0x17b   :  { %v814_v48 = vmax.f32 %v812_v38, 0.0 }
 0x17d   :  { %v867_v22 = vand.u32 4294901760, %v814_v48 }
 0x17f   :  { %v868_v47 = vsub.f32 %v814_v48, %v867_v22  ;;  %973 = vmatmul.f32.vlgmr.msrb.gmra.mxu1 %v867_v22 }
 0x181   :  { %1027 = vmatmul.f32.vlgmr.msrb.gmra.mxu2 %v868_v47  ;;  %v869_v14 = vand.u32 4294901760, %v868_v47 }
 0x183   :  { %1066 = vmatmul.f32.vlgmr.msrb.gmra.mxu3 %v869_v14  ;;  %v870_v3 = vsub.f32 %v868_v47, %v869_v14 }
 0x185   :  { %v871_v42 = vand.u32 4294901760, %v870_v3 }
 0x187   :  { %872 = vmatmul.f32.vlgmr.msrb.gmra.mxu0 %v871_v42  ;;  %1172 = vmatmul.f32.vlgmr.msra.gmra.mxu1 %v867_v22 }
 0x18f   :  { %1135 = vmatmul.f32.vlgmr.msra.gmra.mxu0 %v867_v22 }
 0x1fc   :  { %v974_v63 = vpop.f32.mrf.mxu1 }
 0x204   :  { %v873_v28 = vpop.f32.mrf.mxu0  ;;  %v1028_v31 = vpop.f32.mrf.mxu2 }
 0x205   :  { %v874_v54 = vadd.f32 %v1209_v49, %v873_v28  ;;  %v1173_v27 = vpop.f32.mrf.mxu1 }
 0x206   :  { %v1067_v34 = vpop.f32.mrf.mxu3 }
 0x207   :  { %v975_v60 = vadd.f32 %v974_v63, %v874_v54 }
 0x209   :  { %v1029_v1 = vadd.f32 %v1028_v31, %v975_v60 }
 0x20b   :  { %v1068_v15 = vadd.f32 %v1067_v34, %v1029_v1 }
 0x20c   :  { %v1136_v23 = vpop.f32.mrf.mxu0 }
 0x20d   :  { %v1137_v16 = vadd.f32 %v1136_v23, %v1068_v15 }
 0x20f   :  { %v1174_v59 = vadd.f32 %v1173_v27, %v1137_v16 }
 0x211   :  { %1176 = vst [vmem:[#allocation10] sm:$0xff] %v1174_v59 }
 0x212   :  { %1180 = vsyncadd [#allocation4], 64  ;;  %s1183_s27 = sshll.u32 %s2105_s7, 4  ;;  %s1346_s28 = smov [#allocation10]   ;;  %s1184_s27 = int_to_ptr.hbm [resolvable:$true] %s1183_s27 }
 0x213   :  { %s1181_s6 = sshll.u32 %s1346_s28, 4  ;;  %s1182_s6 = int_to_ptr.vmem [resolvable:$true] %s1181_s6 }
 0x214   :  { %1189 = dma.vmem_to_hbm [thread:$0]  %s1182_s6, 64, %s1184_s27, [#allocation4], %s1342_s13, %s1342_s13, %s1343_s14  }
 0x215   :  { %1336 = dma.done.wait [#allocation4], 128  }
 0x216   :  { %1337 = vsyncadd [#allocation4], 4294967168 }
 0x217   :  { %1194 = vsyncpa [#allocation3], 1 }
 0x218   :  { %1195 = vsyncpa [#allocation6], 1 }
 0x219   :  { %1196 = vsyncpa [#allocation9], 1 }
 0x21a   :  { %1197 = vsyncpa [#allocation4], 1 }

</bundles_post_ra>
